<compile_context>
chip_gen: v7x
topology: tpu7x:2x2x1
jax: 0.10.0
libtpu: 0.0.40
codegen_flags: <defaults>
</compile_context>

<pallas_src>
import functools

import jax
import jax.numpy as jnp
from jax.experimental import pallas as pl
from jax.experimental.pallas import tpu as pltpu


def _round_up(x, m):
    return (x + m - 1) // m * m


def _cdiv(a, b):
    return -(-a // b)


def _embed_kernel(eps, inv_d, patch_ref, wproj_ref, bproj_ref, rmsw_ref,
                  pos_ref, wout_ref, out_ref, act_ref):
    h = pl.program_id(2)

    @pl.when(h == 0)
    def _():
        # Patchifier conv (stride == kernel) as bf16 matmul, f32 accumulate.
        t = jnp.dot(patch_ref[...], wproj_ref[...],
                    preferred_element_type=jnp.float32)
        t = t + bproj_ref[...]                       # (tn, Dp) + (1, Dp)

        # RMSNorm in f32 (matches x.float() ... .type_as(x)).
        # CONTRACT: padded feature lanes of t are exactly zero (w_proj pad rows
        # and b_proj pad lanes are zero-filled), so sum * (1/D_real) is the
        # exact mean over the true feature width.  Do not pad with non-zeros.
        ms = jnp.sum(t * t, axis=-1, keepdims=True) * inv_d
        t = t * jax.lax.rsqrt(ms + eps)
        t = t * rmsw_ref[...]

        # Positional embedding (bf16 in HBM, upcast for the add).
        t = t + pos_ref[...].astype(jnp.float32)

        # Cache normalized activation for all hidden tiles of this step.
        act_ref[...] = t.astype(act_ref.dtype)

    # out_proj (Linear, no bias): bf16 x bf16 -> f32 accumulate -> out dtype.
    out_ref[...] = jnp.dot(act_ref[...], wout_ref[...],
                           preferred_element_type=jnp.float32
                           ).astype(out_ref.dtype)


def aimv2_embedding(x, conv_w, conv_b, rms_w, pos_embed, out_w, *,
                    patch_size, eps=1e-6, tokens_per_tile=256, out_dtype=None):
    """x: (B, 3, H, W) NCHW.  Returns (B, N, hidden).

    Set out_dtype=jnp.bfloat16 when the consumer accepts bf16 to halve the
    output write-back DMA; default keeps x.dtype.
    """
    B, C, H, W = x.shape
    p = patch_size
    h_tok, w_tok = H // p, W // p
    N = h_tok * w_tok
    D = conv_w.shape[0]            # vision_embedding_intermediate_size
    hidden = out_w.shape[0]
    K1 = C * p * p
    out_dtype = x.dtype if out_dtype is None else out_dtype

    if N > pos_embed.shape[1]:
        # TODO(synk): bilinear interpolation branch of pos_embed (N > num_patches)
        # is not implemented.
        raise NotImplementedError("pos_embed bilinear interpolation branch")

    # ---- padded (lane-dense) sizes ------------------------------------------
    K1p = _round_up(K1, 128)
    Dp = _round_up(D, 128)

    # Hidden-dim tiling: for large hidden keep each w_out / out block <= Dp x 1024
    # so big configs fit v7x's 64 MiB VMEM without shrinking the token tile.
    if hidden > 2048:
        tHp = 1024
    else:
        tHp = _round_up(hidden, 128)
    Hp = _round_up(hidden, tHp)
    num_h = Hp // tHp

    # Token tile: minimize dead tokens when N is not a multiple of tokens_per_tile.
    n_tok_tiles = _cdiv(N, tokens_per_tile)
    tn = _round_up(_cdiv(N, n_tok_tiles), 8)
    Np = n_tok_tiles * tn

    # ---- glue: im2col of the strided conv (stride == kernel), in bf16 -------
    # TODO(synk): this NCHW->patch transpose is an extra HBM pass outside the
    # kernel pipeline; an NHWC upstream layout (or in-kernel im2col via
    # memory_space=pl.ANY) would remove it entirely.
    patches = x.astype(jnp.bfloat16).reshape(B, C, h_tok, p, w_tok, p)
    patches = patches.transpose(0, 2, 4, 1, 3, 5).reshape(B, N, K1)
    patches = jnp.pad(patches, ((0, 0), (0, Np - N), (0, K1p - K1)))

    # Conv2d weight (D, C, p, p) -> (K1, D), zero-padded, bf16 for the MXU.
    w_proj = jnp.pad(conv_w.reshape(D, K1).T,
                     ((0, K1p - K1), (0, Dp - D))).astype(jnp.bfloat16)
    b_proj = jnp.pad(conv_b, (0, Dp - D)).reshape(1, Dp).astype(jnp.float32)
    rms_w2 = jnp.pad(rms_w, (0, Dp - D)).reshape(1, Dp).astype(jnp.float32)

    # pos table kept at (Np, Dp), bf16 in HBM (added after RMSNorm; values O(1)).
    pos = jnp.pad(pos_embed[0, :N, :],
                  ((0, Np - N), (0, Dp - D))).astype(jnp.bfloat16)

    # out_proj weight (hidden, D) -> (Dp, Hp), zero-padded, bf16.
    w_out = jnp.pad(out_w.T, ((0, Dp - D), (0, Hp - hidden))).astype(jnp.bfloat16)

    # ---- VMEM limit per generation (leave headroom for Mosaic scratch) ------
    try:
        vmem_cap = pltpu.get_tpu_info().vmem_capacity_bytes
    except Exception:
        vmem_cap = 64 * 1024 * 1024
    vmem_limit = min(int(0.75 * vmem_cap), 96 * 1024 * 1024)

    # Single-buffer grid-invariant operands (constant index_map): double
    # buffering buys nothing there and doubles weight-resident VMEM.
    single = {"pipeline_mode": pl.Buffered(1)}
    wout_kwargs = single if num_h == 1 else {}   # changing index -> keep 2 bufs

    # Grid: (token-tile, batch, hidden-tile). Batch inner so the pos block index
    # is constant across consecutive steps (its DMA gets skipped); hidden-tile
    # innermost and "arbitrary" because of the cached-activation dependency.
    grid = (Np // tn, B, num_h)
    kernel = functools.partial(_embed_kernel, float(eps), float(1.0 / D))

    out = pl.pallas_call(
        kernel,
        out_shape=jax.ShapeDtypeStruct((B, Np, Hp), out_dtype),
        grid_spec=pltpu.PrefetchScalarGridSpec(
            num_scalar_prefetch=0,
            grid=grid,
            in_specs=[
                # patches: (B, Np, K1p), batch dim squeezed; constant across h.
                pl.BlockSpec((None, tn, K1p), lambda j, b, h: (b, j, 0)),
                # conv weight (grid-invariant, fetched once, single buffered)
                pl.BlockSpec((K1p, Dp), lambda j, b, h: (0, 0), **single),
                # conv bias
                pl.BlockSpec((1, Dp), lambda j, b, h: (0, 0), **single),
                # rms weight
                pl.BlockSpec((1, Dp), lambda j, b, h: (0, 0), **single),
                # pos embed: indexed by token tile only (no batch broadcast)
                pl.BlockSpec((tn, Dp), lambda j, b, h: (j, 0)),
                # out_proj weight: hidden-tiled
                pl.BlockSpec((Dp, tHp), lambda j, b, h: (0, h), **wout_kwargs),
            ],
            out_specs=pl.BlockSpec((None, tn, tHp), lambda j, b, h: (b, j, h)),
            scratch_shapes=[pltpu.VMEM((tn, Dp), jnp.bfloat16)],
        ),
        compiler_params=pltpu.CompilerParams(
            dimension_semantics=("parallel", "parallel", "arbitrary"),
            vmem_limit_bytes=vmem_limit,
        ),
    )(patches, w_proj, b_proj, rms_w2, pos, w_out)

    # Strip padding only when padding exists (avoid an extra HBM pass otherwise).
    if Np == N and Hp == hidden:
        return out
    return out[:, :N, :hidden]


def _reference(x, conv_w, conv_b, rms_w, pos_embed, out_w, *, patch_size, eps):
    B, C, H, W = x.shape
    p = patch_size
    h_tok, w_tok = H // p, W // p
    N = h_tok * w_tok
    D = conv_w.shape[0]
    patches = x.reshape(B, C, h_tok, p, w_tok, p).transpose(
        0, 2, 4, 1, 3, 5).reshape(B, N, C * p * p)
    t = patches @ conv_w.reshape(D, -1).T + conv_b
    t = t * jax.lax.rsqrt(jnp.mean(t * t, axis=-1, keepdims=True) + eps)
    t = t * rms_w
    t = t + pos_embed[:, :N, :]
    return t @ out_w.T


if __name__ == "__main__":
    # Small config: image_size=32, patch_size=8 -> 4x4=16 patches per image,
    # vision_embedding_intermediate_size=64, hidden_size=32, batch=2.
    B, C = 2, 3
    image_size, patch_size = 32, 8
    D_inter, hidden = 64, 32
    eps = 1e-6
    num_patches = (image_size // patch_size) ** 2

    key = jax.random.PRNGKey(0)
    kx, kw, kb, kp, ko = jax.random.split(key, 5)

    x = jax.random.normal(kx, (B, C, image_size, image_size), jnp.float32)
    conv_w = jax.random.normal(kw, (D_inter, C, patch_size, patch_size),
                               jnp.float32) * 0.05
    conv_b = jax.random.normal(kb, (D_inter,), jnp.float32) * 0.05
    rms_w = jnp.ones((D_inter,), jnp.float32)          # RMSNorm init: ones
    pos_embed = jax.random.normal(kp, (1, num_patches, D_inter),
                                  jnp.float32) * 0.02
    out_w = jax.random.normal(ko, (hidden, D_inter), jnp.float32) * 0.05

    out = aimv2_embedding(x, conv_w, conv_b, rms_w, pos_embed, out_w,
                          patch_size=patch_size, eps=eps)
    out = jax.block_until_ready(out)

    ref = _reference(x, conv_w, conv_b, rms_w, pos_embed, out_w,
                     patch_size=patch_size, eps=eps)
    assert out.shape == (B, num_patches, hidden)
    # bf16 MXU operands (and bf16 pos) with f32 accumulation: compare to the
    # f32 reference with a correspondingly looser tolerance.
    assert jnp.allclose(out, ref, atol=3e-2, rtol=3e-2), \
        float(jnp.max(jnp.abs(out - ref)))
    print("KERNEL_OK")
</pallas_src>

<mosaic_0001>
module attributes {stable_mosaic.version = 11 : i64} {
  func.func @_embed_kernel(%arg0: i32, %arg1: i32, %arg2: i32, %arg3: memref<1x16x256xbf16, #tpu.memory_space<vmem>>, %arg4: memref<256x128xbf16, #tpu.memory_space<vmem>>, %arg5: memref<1x128xf32, #tpu.memory_space<vmem>>, %arg6: memref<1x128xf32, #tpu.memory_space<vmem>>, %arg7: memref<16x128xbf16, #tpu.memory_space<vmem>>, %arg8: memref<128x128xbf16, #tpu.memory_space<vmem>>, %arg9: memref<1x16x128xf32, #tpu.memory_space<vmem>>, %arg10: memref<16x128xbf16, #tpu.memory_space<vmem>>) attributes {dimension_semantics = [#tpu.dimension_semantics<parallel>, #tpu.dimension_semantics<parallel>, #tpu.dimension_semantics<arbitrary>], iteration_bounds = array<i64: 1, 2, 1>, scalar_prefetch = 0 : i64, scratch_operands = 1 : i64, tpu.core_type = #tpu.core_type<tc>, window_params = [{transform_indices = @transform_0, window_bounds = array<i64: 1, 16, 256>}, {pipeline_mode = #tpu.pipeline_mode<synchronous>, transform_indices = @transform_1, window_bounds = array<i64: 256, 128>}, {pipeline_mode = #tpu.pipeline_mode<synchronous>, transform_indices = @transform_2, window_bounds = array<i64: 1, 128>}, {pipeline_mode = #tpu.pipeline_mode<synchronous>, transform_indices = @transform_3, window_bounds = array<i64: 1, 128>}, {transform_indices = @transform_4, window_bounds = array<i64: 16, 128>}, {pipeline_mode = #tpu.pipeline_mode<synchronous>, transform_indices = @transform_5, window_bounds = array<i64: 128, 128>}, {transform_indices = @transform_6, window_bounds = array<i64: 1, 16, 128>}]} {
    %c0_i32 = arith.constant 0 : i32
    %0 = arith.cmpi eq, %arg2, %c0_i32 : i32
    %1 = arith.extui %0 : i1 to i32
    %c0_i32_0 = arith.constant 0 : i32
    %2 = arith.cmpi ne, %1, %c0_i32_0 : i32
    scf.if %2 {
      %c0_7 = arith.constant 0 : index
      %c0_8 = arith.constant 0 : index
      %c0_9 = arith.constant 0 : index
      %9 = vector.load %arg3[%c0_7, %c0_8, %c0_9] : memref<1x16x256xbf16, #tpu.memory_space<vmem>>, vector<1x16x256xbf16>
      %10 = vector.shape_cast %9 : vector<1x16x256xbf16> to vector<16x256xbf16>
      %c0_10 = arith.constant 0 : index
      %c0_11 = arith.constant 0 : index
      %11 = vector.load %arg4[%c0_10, %c0_11] : memref<256x128xbf16, #tpu.memory_space<vmem>>, vector<256x128xbf16>
      %cst_12 = arith.constant dense<0.000000e+00> : vector<16x128xf32>
      %12 = tpu.matmul %10, %11, %cst_12 {dimension_numbers = #tpu.dot_dimension_numbers<[1], [0], [0], [1], [0, 0, 1, 1], [], []>} : vector<16x256xbf16>, vector<256x128xbf16>, vector<16x128xf32> -> vector<16x128xf32>
      %c0_13 = arith.constant 0 : index
      %c0_14 = arith.constant 0 : index
      %13 = vector.load %arg5[%c0_13, %c0_14] : memref<1x128xf32, #tpu.memory_space<vmem>>, vector<1x128xf32>
      %14 = vector.broadcast %13 : vector<1x128xf32> to vector<16x128xf32>
      %15 = arith.addf %12, %14 : vector<16x128xf32>
      %16 = arith.mulf %15, %15 : vector<16x128xf32>
      %cst_15 = arith.constant dense<0.000000e+00> : vector<16xf32>
      %17 = vector.multi_reduction <add>, %16, %cst_15 [1] : vector<16x128xf32> to vector<16xf32>
      %18 = vector.shape_cast %17 : vector<16xf32> to vector<16x1xf32>
      %cst_16 = arith.constant 1.562500e-02 : f32
      %19 = vector.broadcast %cst_16 : f32 to vector<16x1xf32>
      %20 = arith.mulf %18, %19 : vector<16x1xf32>
      %cst_17 = arith.constant 9.99999997E-7 : f32
      %21 = vector.broadcast %cst_17 : f32 to vector<16x1xf32>
      %22 = arith.addf %20, %21 : vector<16x1xf32>
      %23 = math.rsqrt %22 : vector<16x1xf32>
      %24 = vector.broadcast %23 : vector<16x1xf32> to vector<16x128xf32>
      %25 = arith.mulf %15, %24 : vector<16x128xf32>
      %c0_18 = arith.constant 0 : index
      %c0_19 = arith.constant 0 : index
      %26 = vector.load %arg6[%c0_18, %c0_19] : memref<1x128xf32, #tpu.memory_space<vmem>>, vector<1x128xf32>
      %27 = vector.broadcast %26 : vector<1x128xf32> to vector<16x128xf32>
      %28 = arith.mulf %25, %27 : vector<16x128xf32>
      %c0_20 = arith.constant 0 : index
      %c0_21 = arith.constant 0 : index
      %29 = vector.load %arg7[%c0_20, %c0_21] : memref<16x128xbf16, #tpu.memory_space<vmem>>, vector<16x128xbf16>
      %30 = arith.extf %29 : vector<16x128xbf16> to vector<16x128xf32>
      %31 = arith.addf %28, %30 : vector<16x128xf32>
      %32 = arith.truncf %31 : vector<16x128xf32> to vector<16x128xbf16>
      %c0_22 = arith.constant 0 : index
      %c0_23 = arith.constant 0 : index
      %33 = vector.load %arg10[%c0_22, %c0_23] : memref<16x128xbf16, #tpu.memory_space<vmem>>, vector<16x128xbf16>
      tpu.vector_store %arg10[%c0_22, %c0_23], %32 {strides = array<i32>} : memref<16x128xbf16, #tpu.memory_space<vmem>>, vector<16x128xbf16>,
    } else {
    }
    %c0 = arith.constant 0 : index
    %c0_1 = arith.constant 0 : index
    %3 = vector.load %arg10[%c0, %c0_1] : memref<16x128xbf16, #tpu.memory_space<vmem>>, vector<16x128xbf16>
    %c0_2 = arith.constant 0 : index
    %c0_3 = arith.constant 0 : index
    %4 = vector.load %arg8[%c0_2, %c0_3] : memref<128x128xbf16, #tpu.memory_space<vmem>>, vector<128x128xbf16>
    %cst = arith.constant dense<0.000000e+00> : vector<16x128xf32>
    %5 = tpu.matmul %3, %4, %cst {dimension_numbers = #tpu.dot_dimension_numbers<[1], [0], [0], [1], [0, 0, 1, 1], [], []>} : vector<16x128xbf16>, vector<128x128xbf16>, vector<16x128xf32> -> vector<16x128xf32>
    %c0_4 = arith.constant 0 : index
    %c0_5 = arith.constant 0 : index
    %c0_6 = arith.constant 0 : index
    %6 = vector.load %arg9[%c0_4, %c0_5, %c0_6] : memref<1x16x128xf32, #tpu.memory_space<vmem>>, vector<1x16x128xf32>
    %7 = vector.shape_cast %6 : vector<1x16x128xf32> to vector<16x128xf32>
    %8 = vector.shape_cast %5 : vector<16x128xf32> to vector<1x16x128xf32>
    tpu.vector_store %arg9[%c0_4, %c0_5, %c0_6], %8 {strides = array<i32>} : memref<1x16x128xf32, #tpu.memory_space<vmem>>, vector<1x16x128xf32>,
    return
  }
  func.func @transform_0(%arg0: i32, %arg1: i32, %arg2: i32) -> (i32, i32, i32) {
    %c0_i32 = arith.constant 0 : i32
    %c0_i32_0 = arith.constant 0 : i32
    return %arg1, %arg0, %c0_i32 : i32, i32, i32
  }
  func.func @transform_1(%arg0: i32, %arg1: i32, %arg2: i32) -> (i32, i32) {
    %c0_i32 = arith.constant 0 : i32
    %c0_i32_0 = arith.constant 0 : i32
    %c0_i32_1 = arith.constant 0 : i32
    return %c0_i32, %c0_i32_0 : i32, i32
  }
  func.func @transform_2(%arg0: i32, %arg1: i32, %arg2: i32) -> (i32, i32) {
    %c0_i32 = arith.constant 0 : i32
    %c0_i32_0 = arith.constant 0 : i32
    %c0_i32_1 = arith.constant 0 : i32
    return %c0_i32, %c0_i32_0 : i32, i32
  }
  func.func @transform_3(%arg0: i32, %arg1: i32, %arg2: i32) -> (i32, i32) {
    %c0_i32 = arith.constant 0 : i32
    %c0_i32_0 = arith.constant 0 : i32
    %c0_i32_1 = arith.constant 0 : i32
    return %c0_i32, %c0_i32_0 : i32, i32
  }
  func.func @transform_4(%arg0: i32, %arg1: i32, %arg2: i32) -> (i32, i32) {
    %c0_i32 = arith.constant 0 : i32
    %c0_i32_0 = arith.constant 0 : i32
    return %arg0, %c0_i32 : i32, i32
  }
  func.func @transform_5(%arg0: i32, %arg1: i32, %arg2: i32) -> (i32, i32) {
    %c0_i32 = arith.constant 0 : i32
    %c0_i32_0 = arith.constant 0 : i32
    return %c0_i32, %arg2 : i32, i32
  }
  func.func @transform_6(%arg0: i32, %arg1: i32, %arg2: i32) -> (i32, i32, i32) {
    %c0_i32 = arith.constant 0 : i32
    return %arg1, %arg0, %arg2 : i32, i32, i32
  }
}

</mosaic_0001>

<bundles_post_ra>
// kernel: tpu_custom_call.1
= control target key start
LH: loop header
LB: loop body
LE: loop exit
PB: predicated region body
PF: predicated region fallthrough
CT: control target
= control target key end

     0   :  { %11 = vsyncpa [#allocation4], 0  ;;  %s1554_s0 = inlined_call_operand.hbm [shape: bf16[2,16,256], index: 0, kind: input, shape index: {}]   ;;  %s1555_s1 = inlined_call_operand.hbm [shape: bf16[256,128], index: 1, kind: input, shape index: {}]   ;;  %s1556_s2 = inlined_call_operand.vmem [shape: f32[1,128], index: 2, kind: input, shape index: {}]   ;;  %s1557_s3 = inlined_call_operand.vmem [shape: f32[1,128], index: 3, kind: input, shape index: {}]   ;;  %s1558_s4 = inlined_call_operand.vmem [shape: bf16[16,128], index: 4, kind: input, shape index: {}]   ;;  %s1559_s5 = inlined_call_operand.hbm [shape: bf16[128,128], index: 5, kind: input, shape index: {}]   ;;  %s1560_s6 = inlined_call_operand.hbm [shape: f32[2,16,128], index: 6, kind: output, shape index: {}]  }
   0x1   :  { %13 = vsyncpa [#allocation4 + $0x1], 0 }
   0x2   :  { %14 = vsyncpa [#allocation7], 0 }
   0x3   :  { %15 = vsyncpa [#allocation5], 0 }
   0x4   :  { %17 = vsyncpa [#allocation5 + $0x1], 0  ;;  %s1282_s21 = smov 0   ;;  %s1284_s22 = smov 0  }
   0x5   :  { %s1286_s23 = smov 0   ;;  %s1288_s24 = smov 0  }
   0x6   :  { %s1290_s25 = smov 0   ;;  %s1292_s26 = smov 0  }
   0x7 LB: > { %s834_s27 = sadd.s32 4294967295, %s1233_s26   ;;  %s835_s28 = sadd.s32 4294967294, %s1233_s26   ;;  %s1233_s26 = sphi %s1292_s26, %s23_s26   ;;  %s1229_s25 = sphi %s1290_s25, %s1585_s25   ;;  %s1225_s24 = sphi %s1288_s24, %s1584_s24   ;;  %s1221_s23 = sphi %s1286_s23, %s1583_s23   ;;  %s1217_s22 = sphi %s1284_s22, %s1582_s22   ;;  %s1213_s21 = sphi %s1282_s21, %s1581_s21  }
   0x8   : > { %p64_p0 = scmp.ne.s32.totalorder %s1217_s22, %s1213_s21  ;;  %p1316_p1 = scmp.eq.s32.totalorder %s834_s27, 0 }
   0x9   : > { %p1320_p2 = scmp.eq.s32.totalorder %s834_s27, 1  ;;  %p213_p3 = scmp.eq.s32.totalorder %s835_s28, 1 }
   0xa   : > { %s1566_s29 = scalar_select %p1316_p1, 1, 0 }
   0xb   : > { %p1326_p4 = por %p1316_p1, %p64_p0  ;;  %p836_p5 = scmp.ge.s32.totalorder %s1233_s26, 1 }
   0xc   : > { %p1331_p6 = por %p213_p3, %p64_p0  ;;  %p220_p7 = scmp.lt.s32.totalorder %s1233_s26, 3 }
   0xd   : > { %s1568_s7 = scalar_select %p1326_p4, 1, 0 }
   0xe   : > { %s1569_s8 = scalar_select %p1331_p6, 1, 0 }
   0xf   : > { %p1336_p8 = pnand %p836_p5, %p220_p7  ;;  %s1235_s10 = smov [#allocation6]  }
  0x10   : > { %1570 = sst [smem:[#allocation13_spill]] %s1569_s8  ;;  %s232_s11 = sshll.u32 %s1235_s10, 4  ;;  %s1340_s11 = int_to_ptr.vmem [resolvable:$true] %s232_s11 }
  0x11   : > { %p951_p9 = pneg %p1336_p8  ;;  %s1236_s13 = smov [#allocation8]  }
  0x12   : > { %s262_s14 = sshll.u32 %s1236_s13, 4  ;;  %s1061_s17 = scalar_lea.hbm %s1555_s1, 2048  ;;  %s1351_s14 = int_to_ptr.vmem [resolvable:$true] %s262_s14 }
  0x13   : > { %p1347_p11 = pnand %p951_p9, %p1316_p1  ;;  %p1062_p12 = scmp.ne.s32.totalorder %s1555_s1, %s1061_s17 }
  0x14   : > { %p1068_p5 = scmp.lt.u32.totalorder %s1061_s17, %s1555_s1 }
  0x15   : > { %p1063_p13 = pneg %p1347_p11 }
  0x17   : > { %p1064_p0 = pnand %p1063_p13, %p1062_p12 }
  0x19   : > { %p1065_p3 = pneg %p1064_p0 }
  0x1b   : > { %p1070_p7 = pnand %p1068_p5, %p1065_p3 }
  0x1d   : > { %1073 = shalt.err (!%p1070_p7)
}
  0x1e   : > { %s1074_s28 = scalar_lea.vmem %s1340_s11, 2048  ;;  %p1082_p1 = scmp.lt.s32.totalorder %s1340_s11, %s1340_s11 }
  0x1f   : > { %p1075_p9 = scmp.ne.s32.totalorder %s1340_s11, %s1074_s28  ;;  %p1083_p12 = scmp.lt.s32.totalorder %s1074_s28, %s1074_s28 }
  0x21   : > { %p1077_p10 = pnand %p1075_p9, %p1063_p13  ;;  %p1084_p0 = por %p1083_p12, %p1082_p1 }
  0x23   : > { %p1078_p6 = pneg %p1077_p10 }
  0x25   : > { %p1085_p4 = pnand %p1084_p0, %p1078_p6 }
  0x27   : > { %1088 = shalt.err (!%p1085_p4)
}
  0x28   : > { %s1237_s10 = smov 64   ;;  %s1238_s13 = smov 4  }
  0x29   : > { %954 = dma.hbm_to_vmem [thread:$0]  (!%p1347_p11), %s1555_s1, 2048, %s1340_s11, [#allocation7], %s1237_s10, %s1237_s10, %s1238_s13  }
  0x2a   : > { %s1089_s19 = scalar_lea.hbm %s1559_s5, 1024 }
  0x2b   : > { %p1090_p1 = scmp.ne.s32.totalorder %s1559_s5, %s1089_s19  ;;  %p1096_p10 = scmp.lt.u32.totalorder %s1089_s19, %s1559_s5 }
  0x2d   : > { %p1092_p4 = pnand %p1090_p1, %p1063_p13 }
  0x2f   : > { %p1093_p6 = pneg %p1092_p4 }
  0x31   : > { %p1098_p3 = pnand %p1096_p10, %p1093_p6 }
  0x33   : > { %1101 = shalt.err (!%p1098_p3)
}
  0x34   : > { %s1102_s11 = scalar_lea.vmem %s1351_s14, 1024  ;;  %p1110_p12 = scmp.lt.s32.totalorder %s1351_s14, %s1351_s14 }
  0x35   : > { %p1103_p5 = scmp.ne.s32.totalorder %s1351_s14, %s1102_s11  ;;  %p1111_p0 = scmp.lt.s32.totalorder %s1102_s11, %s1102_s11 }
  0x37   : > { %p1105_p7 = pnand %p1103_p5, %p1063_p13  ;;  %p1112_p1 = por %p1111_p0, %p1110_p12 }
  0x39   : > { %p1106_p9 = pneg %p1105_p7 }
  0x3b   : > { %p1113_p4 = pnand %p1112_p1, %p1106_p9 }
  0x3d   : > { %1116 = shalt.err (!%p1113_p4)
}
  0x3e   : > { %957 = dma.hbm_to_vmem [thread:$0]  (!%p1347_p11), %s1559_s5, 1024, %s1351_s14, [#allocation7], %s1237_s10, %s1237_s10, %s1238_s13  }
  0x3f   : > { %s38_s16 = sadd.s32 1, %s1229_s25  ;;  %s51_s17 = sadd.s32 1, %s1221_s23 }
  0x40   : > { %p40_p13 = scmp.ge.s32.totalorder %s38_s16, 2  ;;  %p58_p6 = scmp.ne.s32.totalorder %s1221_s23, %s1217_s22 }
  0x41   : > { %p59_p10 = scmp.eq.s32.totalorder %s1233_s26, 0  ;;  %p968_p3 = scmp.lt.s32.totalorder %s1233_s26, 2 }
  0x42   : > { %s1587_s16 = smov (%p40_p13, %s38_s16), 0  ;;  %p1415_p7 = por %p1320_p2, %p58_p6 }
  0x43   : > { %p60_p5 = por %p59_p10, %p58_p6  ;;  %s46_s18 = ssub.s32 %s1229_s25, %s1587_s16 }
  0x44   : > { %s1573_s12 = scalar_select %p1415_p7, 1, 0 }
  0x45   : > { %s276_s19 = sand.u32 1, %s1221_s23   ;;  %p49_p9 = scmp.eq.s32.totalorder %s46_s18, 0 }
  0x46   : > { %s841_s14 = sshll.u32 %s276_s19, 4  ;;  %s882_s10 = sshll.u32 %s1229_s25, 8 }
  0x47   : > { %s1424_s13 = scalar_select %p49_p9, %s1221_s23, %s51_s17  }
  0x48   : > { %s1429_s28 = scalar_lea.hbm %s1554_s0, %s882_s10  ;;  %s280_s30 = scalar_lea.vmem [#allocation3], %s841_s14 }
  0x49   : > { %s290_s11 = sshll.u32 %s280_s30, 4  ;;  %p1433_p2 = pnand %p968_p3, %p60_p5  ;;  %s1437_s11 = int_to_ptr.vmem [resolvable:$true] %s290_s11 }
  0x4a   : > { %s1439_s15 = scalar_lea.sflag [#allocation4], %s276_s19  ;;  %s1117_s17 = scalar_lea.hbm %s1429_s28, 256 }
  0x4b   : > { %p1118_p11 = scmp.ne.s32.totalorder %s1429_s28, %s1117_s17  ;;  %p1119_p12 = pneg %p1433_p2 }
  0x4c   : > { %s1122_s10 = scalar_lea.hbm %s1554_s0, 512  ;;  %p1123_p4 = scmp.lt.u32.totalorder %s1429_s28, %s1554_s0 }
  0x4d   : > { %p1120_p0 = pnand %p1119_p12, %p1118_p11  ;;  %p1124_p13 = scmp.lt.u32.totalorder %s1122_s10, %s1117_s17 }
  0x4e   : > { %p1126_p10 = scmp.lt.u32.totalorder %s1117_s17, %s1429_s28 }
  0x4f   : > { %p1121_p1 = pneg %p1120_p0  ;;  %p1125_p6 = por %p1124_p13, %p1123_p4 }
  0x51   : > { %p1127_p3 = por %p1126_p10, %p1125_p6 }
  0x53   : > { %p1128_p5 = pnand %p1127_p3, %p1121_p1 }
  0x55   : > { %1131 = shalt.err (!%p1128_p5)
}
  0x56   : > { %s1132_s19 = scalar_lea.vmem %s1437_s11, 256  ;;  %s1239_s30 = smov [#allocation3]  }
  0x57   : > { %p1133_p9 = scmp.ne.s32.totalorder %s1437_s11, %s1132_s19  ;;  %s1137_s18 = sshll.u32 %s1239_s30, 4  ;;  %s1138_s18 = int_to_ptr.vmem [resolvable:$false] %s1137_s18 }
  0x58   : > { %s1139_s14 = scalar_lea.vmem %s1138_s18, 512  ;;  %p1140_p7 = scmp.lt.s32.totalorder %s1437_s11, %s1138_s18 }
  0x59   : > { %p1135_p11 = pnand %p1133_p9, %p1119_p12  ;;  %p1141_p4 = scmp.lt.s32.totalorder %s1139_s14, %s1132_s19 }
  0x5b   : > { %p1136_p0 = pneg %p1135_p11  ;;  %p1142_p13 = por %p1141_p4, %p1140_p7 }
  0x5d   : > { %p1143_p6 = pnand %p1142_p13, %p1136_p0 }
  0x5f   : > { %1146 = shalt.err (!%p1143_p6)
}
  0x60   : > { %s1240_s17 = smov 128   ;;  %s1241_s10 = smov 8  }
  0x61   : > { %961 = dma.hbm_to_vmem [thread:$0]  (!%p1433_p2), %s1429_s28, 256, %s1437_s11, %s1439_s15, %s1240_s17, %s1240_s17, %s1241_s10  }
  0x62   : > { %302 = sbr.rel (%p1336_p8) target bundleno = 759 (0x2f7), region = 44  ;;  %s1470_s20 = sand.u32 (!%p1336_p8), 1, %s1217_s22  }
  0x63   : > { %s845_s27 = sshll.u32 (!%p1336_p8), %s1470_s20, 4  ;;  %s305_s19 = scalar_lea.sflag (!%p1336_p8), [#allocation4], %s1470_s20 }
  0x64   : > { %s1476_s30 = scalar_lea.vmem (!%p1336_p8), [#allocation3], %s845_s27  ;;  %p1575_p7 = scmp.ne.s32.totalorder (!%p1336_p8), %s1568_s7, 0 }
  0x69   : > { %1200 = dma.done.wait (%p1575_p7), %s305_s19, 256  }
  0x6a   : > { %1202 = vsyncadd (%p1575_p7), %s305_s19, 4294967040  ;;  %p1576_p2 = scmp.ne.s32.totalorder %s1566_s29, 0 }
  0x6c   : > { %1204 = dma.done.wait (%p1576_p2), [#allocation7], 3072  }
  0x6d   : > { %1206 = vsyncadd (%p1576_p2), [#allocation7], 4294964224  ;;  %v1030_v0 = vld [vmem:[#allocation6 + $0x40] sm:$0xff]   ;;  %v1032_v2 = vld [vmem:[#allocation6 + $0x48] sm:$0xff]   ;;  %v1242_v19 = vmov 0.0   ;;  %vm1243_vm0 = vmmov 0  }
  0x6e   : > { %v1031_v1 = vld [vmem:[#allocation6] sm:$0xff]   ;;  %888 = vmatprep.subr.bf16.mxu0 %v1030_v0  ;;  %v1033_v3 = vld [vmem:[#allocation6 + $0x8] sm:$0xff]   ;;  %v1034_v4 = vld [vmem:[#allocation6 + $0x50] sm:$0xff]   ;;  %919 = vmatprep.subr.bf16.mxu1 %v1242_v19  ;;  %s349_s15 = scalar_lea.vmem [#allocation9], %s845_s27  ;;  %s883_s14 = sshll.u32 %s1225_s24, 8 }
  0x6f   : > { %889 = vmatpush3.bf16.msra.mxu0 %v1031_v1  ;;  %v1035_v5 = vld [vmem:[#allocation6 + $0x10] sm:$0xff]   ;;  %v1036_v6 = vld [vmem:[#allocation6 + $0x58] sm:$0xff]   ;;  %v1038_v8 = vld [vmem:[#allocation6 + $0x60] sm:$0xff]   ;;  %935 = vmatprep.mubr.msk.bf16.mxu1 %vm1243_vm0, %v1242_v19  ;;  %s707_s18 = sshll.u32 %s349_s15, 4  ;;  %s1505_s19 = scalar_lea.hbm %s1560_s6, %s883_s14  ;;  %s1500_s18 = int_to_ptr.vmem [resolvable:$true] %s707_s18 }
  0x70   : > { %890 = vmatprep.subr.bf16.mxu0 %v1032_v2  ;;  %v1037_v7 = vld [vmem:[#allocation6 + $0x18] sm:$0xff]   ;;  %v1039_v9 = vld [vmem:[#allocation6 + $0x20] sm:$0xff]   ;;  %v1040_v10 = vld [vmem:[#allocation6 + $0x68] sm:$0xff]   ;;  %s1147_s27 = scalar_lea.vmem %s1500_s18, 256  ;;  %p1577_p12 = scmp.ne.s32.totalorder %s1573_s12, 0 }
  0x71   : > { %v1041_v11 = vld [vmem:[#allocation6 + $0x28] sm:$0xff]   ;;  %v1042_v13 = vld [vmem:[#allocation6 + $0x70] sm:$0xff]   ;;  %v1044_v15 = vld [vmem:[#allocation6 + $0x78] sm:$0xff]   ;;  %p1148_p8 = scmp.ne.s32.totalorder %s1500_s18, %s1147_s27  ;;  %s1244_s24 = smov [#allocation9]  }
  0x72   : > { %v1048_v12 = vld [vmem:[%s1476_s30 + $0x4] ss:$8 sps:$4 sm:$0xff]   ;;  %v1046_v17 = vld [vmem:[%s1476_s30] ss:$8 sps:$4 sm:$0xff]   ;;  %s691_s30 = scalar_lea.sflag [#allocation5], %s1470_s20  ;;  %s1151_s29 = sshll.u32 %s1244_s24, 4  ;;  %s1152_s29 = int_to_ptr.vmem [resolvable:$false] %s1151_s29 }
  0x73   : > { %891 = vmatpush3.bf16.msra.mxu0 %v1033_v3  ;;  %542 = vmatprep.mubr.bf16.mxu0 %v1048_v12  ;;  %v1043_v14 = vld [vmem:[#allocation6 + $0x30] sm:$0xff]   ;;  %v1045_v16 = vld [vmem:[#allocation6 + $0x38] sm:$0xff]   ;;  %v1049_v18 = vld [vmem:[#allocation8] sm:$0xff]   ;;  %p1149_p1 = pnand %p1148_p8, %p1577_p12  ;;  %s1153_s7 = scalar_lea.vmem %s1152_s29, 512 }
  0x74   : > { %892 = vmatprep.subr.bf16.mxu0 %v1034_v4  ;;  %920 = vmatpush3.bf16.msra.mxu1 %v1049_v18  ;;  %v849_v22 = vld [vmem:[%s1556_s2] ss:$0 sm:$0xff]  ;;  %v1050_v31 = vld [vmem:[#allocation8 + $0x8] sm:$0xff]   ;;  %v1051_v32 = vld [vmem:[#allocation8 + $0x10] sm:$0xff]   ;;  %p1154_p3 = scmp.lt.s32.totalorder %s1500_s18, %s1152_s29  ;;  %p1155_p5 = scmp.lt.s32.totalorder %s1153_s7, %s1147_s27 }
  0x75   : > { %921 = vmatprep.subr.bf16.mxu1 %v1242_v19  ;;  %v1052_v33 = vld [vmem:[#allocation8 + $0x18] sm:$0xff]   ;;  %v1053_v34 = vld [vmem:[#allocation8 + $0x20] sm:$0xff]   ;;  %v1054_v35 = vld [vmem:[#allocation8 + $0x28] sm:$0xff]   ;;  %p1150_p10 = pneg %p1149_p1 }
  0x76   : > { %v1055_v36 = vld [vmem:[#allocation8 + $0x30] sm:$0xff]   ;;  %v1056_v37 = vld [vmem:[#allocation8 + $0x38] sm:$0xff]   ;;  %v868_v46 = vld [vmem:[%s1557_s3] ss:$0 sm:$0xff]  ;;  %p1156_p9 = por %p1155_p5, %p1154_p3 }
  0x77   : > { %893 = vmatpush3.bf16.msra.mxu0 %v1035_v5  ;;  %v885_v47 = vld [vmem:[%s1558_s4] sm:$0xff]  }
  0x78   : > { %894 = vmatprep.subr.bf16.mxu0 %v1036_v6  ;;  %922 = vmatpush3.bf16.msra.mxu1 %v1050_v31  ;;  %v886_v51 = vunpack.c.l.bf16 %v885_v47  ;;  %v887_v52 = vunpack.c.h.bf16 %v885_v47  ;;  %p1157_p11 = pnand %p1156_p9, %p1150_p10 }
  0x79   : > { %923 = vmatprep.subr.bf16.mxu1 %v1242_v19 }
  0x7b   : > { %895 = vmatpush3.bf16.msra.mxu0 %v1037_v7 }
  0x7c   : > { %896 = vmatprep.subr.bf16.mxu0 %v1038_v8  ;;  %924 = vmatpush3.bf16.msra.mxu1 %v1051_v32 }
  0x7d   : > { %925 = vmatprep.subr.bf16.mxu1 %v1242_v19 }
  0x7f   : > { %897 = vmatpush3.bf16.msra.mxu0 %v1039_v9 }
  0x80   : > { %898 = vmatprep.subr.bf16.mxu0 %v1040_v10  ;;  %926 = vmatpush3.bf16.msra.mxu1 %v1052_v33 }
  0x81   : > { %927 = vmatprep.subr.bf16.mxu1 %v1242_v19 }
  0x83   : > { %899 = vmatpush3.bf16.msra.mxu0 %v1041_v11 }
  0x84   : > { %900 = vmatprep.subr.bf16.mxu0 %v1042_v13  ;;  %928 = vmatpush3.bf16.msra.mxu1 %v1053_v34 }
  0x85   : > { %929 = vmatprep.subr.bf16.mxu1 %v1242_v19 }
  0x87   : > { %901 = vmatpush3.bf16.msra.mxu0 %v1043_v14 }
  0x88   : > { %902 = vmatprep.subr.bf16.mxu0 %v1044_v15  ;;  %930 = vmatpush3.bf16.msra.mxu1 %v1054_v35 }
  0x89   : > { %931 = vmatprep.subr.bf16.mxu1 %v1242_v19 }
  0x8b   : > { %903 = vmatpush3.bf16.msra.mxu0 %v1045_v16 }
  0x8c   : > { %932 = vmatpush3.bf16.msra.mxu1 %v1055_v36 }
  0x8d   : > { %933 = vmatprep.subr.bf16.mxu1 %v1242_v19 }
  0x8e   : > { %543 = vmatmul.mubr.bf16.vlgmr.msra.gmra.mrb[0].mxu0 %v1046_v17 }
  0x90   : > { %934 = vmatpush3.bf16.msra.mxu1 %v1056_v37 }
 0x161   : > { %v904_v20 = vpop.f32.mrb[0].mxu0 }
 0x162   : > { %v905_v21 = vpop.f32.mrb[1].mxu0 }
 0x163   : > { %v906_v23 = vadd.f32 %v905_v21, %v904_v20  ;;  %v907_v24 = vpop.f32.mrb[2].mxu0 }
 0x164   : > { %v908_v25 = vpop.f32.mrb[3].mxu0 }
 0x165   : > { %v909_v26 = vadd.f32 %v908_v25, %v907_v24  ;;  %v545_v27 = vadd.f32 %v906_v23, %v849_v22 }
 0x167   : > { %v548_v28 = vadd.f32 %v909_v26, %v849_v22  ;;  %v551_v29 = vmul.f32 %v545_v27, %v545_v27 }
 0x169   : > { %553 = vadd.xlane.f32.xlu0 %v551_v29  ;;  %v552_v30 = vmul.f32 %v548_v28, %v548_v28 }
 0x16d   : > { %555 = vadd.xlane.f32.xlu0 %v552_v30 }
 0x1f6   : > { %v554_v38 = vpop.xlane.xlu0 %553 }
 0x1f7   : > { %v557_v39 = vmul.f32 0.015625, %v554_v38 }
 0x1f9   : > { %v559_v40 = vadd.f32 1e-06, %v557_v39 }
 0x1fa   : > { %v556_v41 = vpop.xlane.xlu0 %555 }
 0x1fb   : > { %1057 = vrsqrt.f32 %v559_v40  ;;  %v558_v42 = vmul.f32 0.015625, %v556_v41 }
 0x1fd   : > { %v560_v43 = vadd.f32 1e-06, %v558_v42 }
 0x1ff   : > { %1059 = vrsqrt.f32 %v560_v43 }
 0x205   : > { %v1058_v44 = vpop.eup %1057 }
 0x206   : > { %v563_v45 = vmul.f32 %v1058_v44, %v545_v27 }
 0x208   : > { %v572_v50 = vmul.f32 %v868_v46, %v563_v45 }
 0x209   : > { %v1060_v48 = vpop.eup %1059 }
 0x20a   : > { %v564_v49 = vmul.f32 %v1060_v48, %v548_v28  ;;  %v578_v54 = vadd.f32 %v886_v51, %v572_v50 }
 0x20c   : > { %v573_v53 = vmul.f32 %v868_v46, %v564_v49 }
 0x20e   : > { %v579_v55 = vadd.f32 %v887_v52, %v573_v53 }
 0x210   : > { %v580_v56 = vpack.c.bf16 %v579_v55, %v578_v54 }
 0x212   : > { %936 = vmatmul.mubr.bf16.vlgmr.msra.gmra.mrb[0].mxu1 %v580_v56 }
 0x2e5   : > { %v681_v57 = vpop.f32.mrb[0].mxu1 }
 0x2e6   : > { %688 = vst [vmem:[%s349_s15] sm:$0xff] %v681_v57  ;;  %v937_v58 = vpop.f32.mrb[1].mxu1 }
 0x2e7   : > { %v684_v59 = vpop.f32.mrb[2].mxu1 }
 0x2e8   : > { %689 = vst [vmem:[%s349_s15 + $0x8] sm:$0xff] %v684_v59  ;;  %v938_v60 = vpop.f32.mrb[3].mxu1 }
 0x2e9   : > { %1160 = shalt.err (!%p1157_p11)
}
 0x2ea   : > { %s1161_s9 = scalar_lea.hbm %s1505_s19, 256  ;;  %s1165_s8 = scalar_lea.hbm %s1560_s6, 512 }
 0x2eb   : > { %p1162_p0 = scmp.ne.s32.totalorder %s1505_s19, %s1161_s9  ;;  %p1166_p6 = scmp.lt.u32.totalorder %s1505_s19, %s1560_s6 }
 0x2ec   : > { %p1167_p7 = scmp.lt.u32.totalorder %s1165_s8, %s1161_s9  ;;  %p1169_p8 = scmp.lt.u32.totalorder %s1161_s9, %s1505_s19 }
 0x2ed   : > { %p1163_p4 = pnand %p1162_p0, %p1577_p12 }
 0x2ee   : > { %p1168_p2 = por %p1167_p7, %p1166_p6 }
 0x2ef   : > { %p1164_p13 = pneg %p1163_p4 }
 0x2f0   : > { %p1170_p1 = por %p1169_p8, %p1168_p2 }
 0x2f2   : > { %p1171_p10 = pnand %p1170_p1, %p1164_p13 }
 0x2f4   : > { %1174 = shalt.err (!%p1171_p10)
}
 0x2f5   : > { %s1245_s17 = smov 128   ;;  %s1246_s10 = smov 8  }
 0x2f6   : > { %949 = dma.vmem_to_hbm [thread:$0]  (%p1577_p12), %s1500_s18, 256, %s1505_s19, %s691_s30, %s1245_s17, %s1245_s17, %s1246_s10  }
 0x2f7 PF: > { %s1578_s27 = sld [smem:[#allocation13_spill]]  ;;  %s722_s24 = sand.u32 1, %s1213_s21  }
 0x2f8   : > { %p1580_p5 = scmp.ge.s32.totalorder %s1233_s26, 2  ;;  %s723_s29 = scalar_lea.sflag [#allocation5], %s722_s24 }
 0x2fd   : > { %p1579_p3 = scmp.ne.s32.totalorder %s1578_s27, 0 }
 0x2ff   : > { %p963_p9 = pnand %p1580_p5, %p1579_p3 }
 0x301   : > { %1208 = dma.done.wait (!%p963_p9), %s723_s29, 256  }
 0x302   : > { %1210 = vsyncadd (!%p963_p9), %s723_s29, 4294967040  ;;  %s23_s26 = sadd.s32 1, %s1233_s26   ;;  %s1581_s21 = smov %s1217_s22 }
 0x303   : > { %p20_p11 = scmp.ge.s32.totalorder %s23_s26, 4   ;;  %s1582_s22 = smov %s1221_s23 }
 0x304   : > { %s1583_s23 = smov %s1424_s13  ;;  %s1584_s24 = smov %s1229_s25 }
 0x305   : > { %s1585_s25 = smov %s1587_s16  ;;  %22 = sbr.rel (!%p20_p11) target bundleno = 7 (0x7), region = 105 }
 0x30c   :  { %728 = vsyncpa [#allocation4], 1 }
 0x30d   :  { %730 = vsyncpa [#allocation4 + $0x1], 1 }
 0x30e   :  { %731 = vsyncpa [#allocation7], 1 }
 0x30f   :  { %732 = vsyncpa [#allocation5], 1 }
 0x310   :  { %734 = vsyncpa [#allocation5 + $0x1], 1 }

</bundles_post_ra>
